<compile_context>
chip_gen: v7x
topology: tpu7x:2x2x1
jax: 0.10.0
libtpu: 0.0.40
codegen_flags: <defaults>
</compile_context>

<pallas_src>
import jax
import jax.numpy as jnp
from jax import lax
from jax.experimental import pallas as pl
from jax.experimental.pallas import tpu as pltpu


def _aux_mlp_kernel(x_ref, w1_ref, b1_ref, w2_ref, b2_ref, o_ref):
    # h = relu(x @ W1 + b1); MXU accumulates in f32, bias add / ReLU stay f32.
    h = jnp.dot(x_ref[...], w1_ref[...], preferred_element_type=jnp.float32)
    h = jnp.maximum(h + b1_ref[...], 0.0)
    # out = h @ W2^T + b2, expressed as a dot_general contracting the hidden
    # axis of both operands -> [batch_tile, action_dim]; no explicit transpose.
    out = lax.dot_general(
        h, w2_ref[...],
        dimension_numbers=(((1,), (1,)), ((), ())),
        preferred_element_type=jnp.float32,
    )
    o_ref[...] = (out + b2_ref[...]).astype(o_ref.dtype)


def _round_up(x, m):
    return ((x + m - 1) // m) * m


def auxiliary_model_forward(features, w1, b1, w2, b2, *, batch_tile=None):
    """features: [B, belief_dim]
       w1: [belief_dim, hidden]   (transposed vs. PyTorch nn.Linear.weight)
       b1: [1, hidden]
       w2: [action_dim, hidden]   (PyTorch nn.Linear.weight layout)
       b2: [1, action_dim]
       returns: [B, action_dim] float32
    """
    B, belief_dim = features.shape
    hidden = w1.shape[1]
    action_dim = w2.shape[0]

    # --- tile selection -------------------------------------------------------
    if batch_tile is None:
        if B <= 256:
            batch_tile = _round_up(max(B, 8), 8)        # single small block
        else:
            # Big tiles amortize per-step overhead; keep >= 2 grid steps so the
            # "parallel" batch axis can be sharded across both v7x TensorCores.
            batch_tile = min(4096, _round_up(pl.cdiv(B, 2), 128))
    batch_tile = _round_up(min(max(batch_tile, 8), 8192), 8)
    grid = (pl.cdiv(B, batch_tile),)

    # Tiny, constant-cost casts so each matmul sees uniform operand dtypes; the
    # large `features` stream is consumed at its native dtype (no extra HBM pass).
    w1c = w1.astype(features.dtype)
    b1f = b1.astype(jnp.float32)
    w2f = w2.astype(jnp.float32)
    b2f = b2.astype(jnp.float32)

    # --- explicit VMEM budget: fail loudly if tiles / widths ever grow --------
    vmem_limit = 32 * 1024 * 1024
    x_item = jnp.dtype(features.dtype).itemsize
    est_vmem = (2 * batch_tile * belief_dim * x_item        # x (double-buffered)
                + 2 * batch_tile * action_dim * 4           # out (double-buffered)
                + batch_tile * hidden * 4                   # h intermediate
                + (belief_dim * hidden + hidden) * 4        # W1 + b1 (resident)
                + (action_dim * hidden + action_dim) * 4)   # W2 + b2 (resident)
    assert est_vmem < vmem_limit // 2, (
        f"aux-MLP VMEM footprint {est_vmem} B too close to limit {vmem_limit} B")

    return pl.pallas_call(
        _aux_mlp_kernel,
        out_shape=jax.ShapeDtypeStruct((B, action_dim), jnp.float32),
        grid_spec=pltpu.PrefetchScalarGridSpec(
            num_scalar_prefetch=0,
            grid=grid,
            in_specs=[
                pl.BlockSpec((batch_tile, belief_dim), lambda i: (i, 0)),  # x streams
                pl.BlockSpec((belief_dim, hidden), lambda i: (0, 0)),      # W1 resident
                pl.BlockSpec((1, hidden), lambda i: (0, 0)),               # b1 resident
                pl.BlockSpec((action_dim, hidden), lambda i: (0, 0)),      # W2 resident
                pl.BlockSpec((1, action_dim), lambda i: (0, 0)),           # b2 resident
            ],
            out_specs=pl.BlockSpec((batch_tile, action_dim), lambda i: (i, 0)),
        ),
        compiler_params=pltpu.CompilerParams(
            dimension_semantics=("parallel",),
            vmem_limit_bytes=vmem_limit,
        ),
    )(features, w1c, b1f, w2f, b2f)


def init_params(key, belief_dim, disturb_hidden_dim, action_dim):
    """Deterministic synthetic init mirroring the PyTorch module's shapes.
    Layer-1 weight stored as [in, out]; layer-2 weight kept in PyTorch's
    [out, in] layout (exactly the contraction layout the kernel wants)."""
    k1, k2, k3 = jax.random.split(key, 3)
    bound1 = 1.0 / jnp.sqrt(belief_dim)
    bound2 = 1.0 / jnp.sqrt(disturb_hidden_dim)
    w1 = jax.random.uniform(k1, (belief_dim, disturb_hidden_dim),
                            jnp.float32, -bound1, bound1)
    b1 = jax.random.uniform(k2, (1, disturb_hidden_dim),
                            jnp.float32, -bound1, bound1)
    w2 = jax.random.uniform(k3, (action_dim, disturb_hidden_dim),
                            jnp.float32, -bound2, bound2)
    # torch.nn.init.constant_(self.classifier[-1].bias, -4.5)
    b2 = jnp.full((1, action_dim), -4.5, dtype=jnp.float32)
    return w1, b1, w2, b2


def _reference(features, w1, b1, w2, b2):
    """Pure-JAX f32 reference of the module's forward pass."""
    h = jnp.dot(features, w1, preferred_element_type=jnp.float32) + b1
    h = jnp.maximum(h, 0.0)
    return jnp.dot(h, w2.T, preferred_element_type=jnp.float32) + b2


if __name__ == "__main__":
    belief_dim = 32
    disturb_hidden_dim = 128   # module default
    action_dim = 13            # e.g. ArmPointNav action space size

    key = jax.random.PRNGKey(0)
    kx, kp, ks = jax.random.split(key, 3)
    w1, b1, w2, b2 = init_params(kp, belief_dim, disturb_hidden_dim, action_dim)

    # Main case: grid = 2 with a ragged last tile (384 rows, 256-row tiles),
    # exercising the no-pad partial-block path.
    B = 384
    features = jax.random.normal(kx, (B, belief_dim), dtype=jnp.float32)
    out = jax.block_until_ready(auxiliary_model_forward(features, w1, b1, w2, b2))
    assert out.shape == (B, action_dim)
    ref = _reference(features, w1, b1, w2, b2)
    assert jnp.allclose(out, ref, atol=1e-4, rtol=1e-4)

    # Tiny-batch path: single exact 8-row block.
    small = jax.random.normal(ks, (8, belief_dim), dtype=jnp.float32)
    out_small = jax.block_until_ready(
        auxiliary_model_forward(small, w1, b1, w2, b2))
    assert out_small.shape == (8, action_dim)
    assert jnp.allclose(out_small, _reference(small, w1, b1, w2, b2),
                        atol=1e-4, rtol=1e-4)

    print("KERNEL_OK")
</pallas_src>

<mosaic_0001>
module attributes {stable_mosaic.version = 11 : i64} {
  func.func @_aux_mlp_kernel(%arg0: i32, %arg1: memref<256x32xf32, #tpu.memory_space<vmem>>, %arg2: memref<32x128xf32, #tpu.memory_space<vmem>>, %arg3: memref<1x128xf32, #tpu.memory_space<vmem>>, %arg4: memref<13x128xf32, #tpu.memory_space<vmem>>, %arg5: memref<1x13xf32, #tpu.memory_space<vmem>>, %arg6: memref<256x13xf32, #tpu.memory_space<vmem>>) attributes {dimension_semantics = [#tpu.dimension_semantics<parallel>], iteration_bounds = array<i64: 2>, scalar_prefetch = 0 : i64, scratch_operands = 0 : i64, tpu.core_type = #tpu.core_type<tc>, window_params = [{transform_indices = @transform_0, window_bounds = array<i64: 256, 32>}, {pipeline_mode = #tpu.pipeline_mode<synchronous>, transform_indices = @transform_1, window_bounds = array<i64: 32, 128>}, {pipeline_mode = #tpu.pipeline_mode<synchronous>, transform_indices = @transform_2, window_bounds = array<i64: 1, 128>}, {pipeline_mode = #tpu.pipeline_mode<synchronous>, transform_indices = @transform_3, window_bounds = array<i64: 13, 128>}, {pipeline_mode = #tpu.pipeline_mode<synchronous>, transform_indices = @transform_4, window_bounds = array<i64: 1, 13>}, {transform_indices = @transform_5, window_bounds = array<i64: 256, 13>}]} {
    %c0 = arith.constant 0 : index
    %c0_0 = arith.constant 0 : index
    %0 = vector.load %arg1[%c0, %c0_0] : memref<256x32xf32, #tpu.memory_space<vmem>>, vector<256x32xf32>
    %c0_1 = arith.constant 0 : index
    %c0_2 = arith.constant 0 : index
    %1 = vector.load %arg2[%c0_1, %c0_2] : memref<32x128xf32, #tpu.memory_space<vmem>>, vector<32x128xf32>
    %cst = arith.constant dense<0.000000e+00> : vector<256x128xf32>
    %2 = tpu.matmul %0, %1, %cst {dimension_numbers = #tpu.dot_dimension_numbers<[1], [0], [0], [1], [0, 0, 1, 1], [], []>} : vector<256x32xf32>, vector<32x128xf32>, vector<256x128xf32> -> vector<256x128xf32>
    %c0_3 = arith.constant 0 : index
    %c0_4 = arith.constant 0 : index
    %3 = vector.load %arg3[%c0_3, %c0_4] : memref<1x128xf32, #tpu.memory_space<vmem>>, vector<1x128xf32>
    %4 = vector.broadcast %3 : vector<1x128xf32> to vector<256x128xf32>
    %5 = arith.addf %2, %4 : vector<256x128xf32>
    %cst_5 = arith.constant 0.000000e+00 : f32
    %6 = vector.broadcast %cst_5 : f32 to vector<256x128xf32>
    %7 = arith.maximumf %5, %6 : vector<256x128xf32>
    %c0_6 = arith.constant 0 : index
    %c0_7 = arith.constant 0 : index
    %8 = vector.load %arg4[%c0_6, %c0_7] : memref<13x128xf32, #tpu.memory_space<vmem>>, vector<13x128xf32>
    %cst_8 = arith.constant dense<0.000000e+00> : vector<256x13xf32>
    %9 = tpu.matmul %7, %8, %cst_8 {dimension_numbers = #tpu.dot_dimension_numbers<[1], [1], [0], [0], [0, 0, 1, 0], [], []>} : vector<256x128xf32>, vector<13x128xf32>, vector<256x13xf32> -> vector<256x13xf32>
    %c0_9 = arith.constant 0 : index
    %c0_10 = arith.constant 0 : index
    %10 = vector.load %arg5[%c0_9, %c0_10] : memref<1x13xf32, #tpu.memory_space<vmem>>, vector<1x13xf32>
    %11 = vector.broadcast %10 : vector<1x13xf32> to vector<256x13xf32>
    %12 = arith.addf %9, %11 : vector<256x13xf32>
    %c0_11 = arith.constant 0 : index
    %c0_12 = arith.constant 0 : index
    %13 = vector.load %arg6[%c0_11, %c0_12] : memref<256x13xf32, #tpu.memory_space<vmem>>, vector<256x13xf32>
    tpu.vector_store %arg6[%c0_11, %c0_12], %12 {strides = array<i32>} : memref<256x13xf32, #tpu.memory_space<vmem>>, vector<256x13xf32>,
    return
  }
  func.func @transform_0(%arg0: i32) -> (i32, i32) {
    %c0_i32 = arith.constant 0 : i32
    %c0_i32_0 = arith.constant 0 : i32
    return %arg0, %c0_i32 : i32, i32
  }
  func.func @transform_1(%arg0: i32) -> (i32, i32) {
    %c0_i32 = arith.constant 0 : i32
    %c0_i32_0 = arith.constant 0 : i32
    %c0_i32_1 = arith.constant 0 : i32
    return %c0_i32, %c0_i32_0 : i32, i32
  }
  func.func @transform_2(%arg0: i32) -> (i32, i32) {
    %c0_i32 = arith.constant 0 : i32
    %c0_i32_0 = arith.constant 0 : i32
    %c0_i32_1 = arith.constant 0 : i32
    return %c0_i32, %c0_i32_0 : i32, i32
  }
  func.func @transform_3(%arg0: i32) -> (i32, i32) {
    %c0_i32 = arith.constant 0 : i32
    %c0_i32_0 = arith.constant 0 : i32
    %c0_i32_1 = arith.constant 0 : i32
    return %c0_i32, %c0_i32_0 : i32, i32
  }
  func.func @transform_4(%arg0: i32) -> (i32, i32) {
    %c0_i32 = arith.constant 0 : i32
    %c0_i32_0 = arith.constant 0 : i32
    %c0_i32_1 = arith.constant 0 : i32
    return %c0_i32, %c0_i32_0 : i32, i32
  }
  func.func @transform_5(%arg0: i32) -> (i32, i32) {
    %c0_i32 = arith.constant 0 : i32
    %c0_i32_0 = arith.constant 0 : i32
    return %arg0, %c0_i32 : i32, i32
  }
}

</mosaic_0001>

<bundles_post_ra>
// kernel: tpu_custom_call.1
= control target key start
LH: loop header
LB: loop body
LE: loop exit
PB: predicated region body
PF: predicated region fallthrough
CT: control target
= control target key end

     0   :  { %s1706_s18 = smov 0   ;;  %s1708_s19 = smov 0   ;;  %s2107_s0 = inlined_call_operand.vmem [shape: f32[384,32], index: 0, kind: input, shape index: {}]   ;;  %s2108_s1 = inlined_call_operand.vmem [shape: f32[32,128], index: 1, kind: input, shape index: {}]   ;;  %s2109_s2 = inlined_call_operand.vmem [shape: f32[1,128], index: 2, kind: input, shape index: {}]   ;;  %s2110_s3 = inlined_call_operand.vmem [shape: f32[13,128], index: 3, kind: input, shape index: {}]   ;;  %s2111_s4 = inlined_call_operand.vmem [shape: f32[1,13], index: 4, kind: input, shape index: {}]   ;;  %s2112_s5 = inlined_call_operand.vmem [shape: f32[384,13], index: 5, kind: output, shape index: {}]  }
   0x1   :  { %s1710_s20 = smov 0  }
   0x2 LB: > { %s1719_s21 = sadd.s32 4294967295, %s1642_s20   ;;  %s1721_s22 = sadd.s32 1, %s1642_s20   ;;  %s1642_s20 = sphi %s1710_s20, %s2121_s20   ;;  %s1638_s19 = sphi %s1708_s19, %s2120_s19   ;;  %s1634_s18 = sphi %s1706_s18, %s2119_s18  }
   0x3   : > { %s129_s23 = ssub.s32 %s1642_s20, %s1721_s22  ;;  %s132_s24 = sadd.s32 1, %s1638_s19 }
   0x4   : > { %p130_p0 = scmp.eq.s32.totalorder %s129_s23, 0  ;;  %p142_p1 = scmp.ne.s32.totalorder %s1638_s19, %s1634_s18 }
   0x5   : > { %p143_p2 = scmp.eq.s32.totalorder %s1719_s21, 1  ;;  %p1252_p3 = scmp.ge.s32.totalorder %s1642_s20, 1 }
   0x6   : > { %s1729_s25 = scalar_select %p130_p0, %s1638_s19, %s132_s24  }
   0x7   : > { %p1731_p4 = por %p143_p2, %p142_p1  ;;  %p196_p5 = scmp.lt.s32.totalorder %s1642_s20, 3 }
   0x9   : > { %p197_p6 = pnand %p1252_p3, %p196_p5 }
   0xa   : > { %v278_v0 = vld [vmem:[%s2108_s1] sm:$0xff] (!%p197_p6)  ;;  %v279_v1 = vld [vmem:[%s2108_s1 + $0x8] sm:$0xff] (!%p197_p6)  ;;  %v280_v2 = vld [vmem:[%s2108_s1 + $0x10] sm:$0xff] (!%p197_p6)  ;;  %s1745_s8 = sshll.u32 (!%p197_p6), %s1719_s21, 5  ;;  %vm289_vm0 = vcmask (!%p197_p6), 261120   ;;  %s224_s28 = sand.u32 (!%p197_p6), 1, %s1634_s18  }
   0xb   : > { %200 = sbr.rel (%p197_p6) target bundleno = 574 (0x23e), region = 40  ;;  %v1488_v3 = vpack.c.bf16 (!%p197_p6), %v279_v1, %v278_v0  ;;  %v281_v4 = vld [vmem:[%s2108_s1 + $0x18] sm:$0xff] (!%p197_p6)  ;;  %p232_p7 = scmp.lt.s32.totalorder (!%p197_p6), %s1745_s8, 47  ;;  %v643_v5 = vld [vmem:[%s2110_s3] sm:$0xff] (!%p197_p6)  ;;  %v644_v6 = vld [vmem:[%s2110_s3 + $0x8] sm:$0x1f] (!%p197_p6) }
   0xc   : > { %v1492_v7 = vpack.c.bf16 (!%p197_p6), %v281_v4, %v280_v2  ;;  %v1496_v8 = vpack.c.bf16 (!%p197_p6), %v644_v6, %v643_v5  ;;  %v1830_v41 = vld [vmem:[%s2109_s2] ss:$0 sm:$0xff] (!%p197_p6)  ;;  %s1253_s29 = sshll.u32 (!%p197_p6), %s224_s28, 8  ;;  %vm877_vm1 = vcmask (!%p197_p6), 105472  }
   0xd   : > { %1489 = vmatprep.subr.bf16.mxu0 (!%p197_p6), %v1488_v3  ;;  %s1872_s7 = scalar_lea.vmem (!%p197_p6), [#allocation2], %s1253_s29  }
   0xe   : > { %1491 = vmatpush3.bf16.msra.mxu0 (!%p197_p6), %v1488_v3  ;;  %1497 = vmatprep.subr.bf16.mxu1 (!%p197_p6), %v1496_v8 }
   0xf   : > { %1493 = vmatprep.subr.bf16.mxu0 (!%p197_p6), %v1492_v7  ;;  %1499 = vmatpush3.bf16.xpose.msra.mxu1 (!%p197_p6), %v1496_v8 }
  0x12   : > { %s233_s15 = scalar_select %p232_p7, %s1745_s8, 47  ;;  %1495 = vmatpush3.bf16.msra.mxu0 %v1492_v7 }
  0x13   : > { %s918_s18 = ssub.s32 (%p1731_p4), 48, %s1745_s8  ;;  %s1307_s9 = sshll.u32 (%p1731_p4), %s1719_s21, 8 }
  0x14   : > { %s1255_s16 = sshll.u32 %s233_s15, 3  ;;  %p919_p8 = scmp.lt.s32.totalorder (%p1731_p4), %s918_s18, 32 }
  0x15   : > { %s1761_s23 = scalar_lea.vmem %s2107_s0, %s1255_s16  ;;  %s1975_s12 = scalar_lea.vmem (%p1731_p4), %s2112_s5, %s1307_s9  }
  0x16   : > { %v246_v9 = vld [vmem:[%s1761_s23] sm:$0xff]  ;;  %v247_v10 = vld [vmem:[%s1761_s23 + $0x8] sm:$0xff]  ;;  %v248_v11 = vld [vmem:[%s1761_s23 + $0x10] sm:$0xff] }
  0x17   : > { %1388 = vmatprep.mubr.msk.f32.mxu0 %vm289_vm0, %v246_v9  ;;  %v249_v12 = vld [vmem:[%s1761_s23 + $0x18] sm:$0xff]  ;;  %v250_v13 = vld [vmem:[%s1761_s23 + $0x20] sm:$0xff]  ;;  %v251_v14 = vld [vmem:[%s1761_s23 + $0x28] sm:$0xff] }
  0x18   : > { %1389 = vmatmul.mubr.msk.f32.vlgmr.msra.gmra.mrb[0].mxu0 %vm289_vm0, %v247_v10  ;;  %v252_v15 = vld [vmem:[%s1761_s23 + $0x30] sm:$0xff]  ;;  %v253_v16 = vld [vmem:[%s1761_s23 + $0x38] sm:$0xff]  ;;  %v254_v17 = vld [vmem:[%s1761_s23 + $0x40] sm:$0xff] }
  0x19   : > { %1391 = vmatprep.mubr.msk.f32.mxu0 %vm289_vm0, %v248_v11  ;;  %v255_v18 = vld [vmem:[%s1761_s23 + $0x48] sm:$0xff]  ;;  %v256_v19 = vld [vmem:[%s1761_s23 + $0x50] sm:$0xff]  ;;  %v257_v20 = vld [vmem:[%s1761_s23 + $0x58] sm:$0xff] }
  0x1a   : > { %v258_v21 = vld [vmem:[%s1761_s23 + $0x60] sm:$0xff]  ;;  %v259_v22 = vld [vmem:[%s1761_s23 + $0x68] sm:$0xff]  ;;  %v260_v23 = vld [vmem:[%s1761_s23 + $0x70] sm:$0xff] }
  0x1b   : > { %v261_v24 = vld [vmem:[%s1761_s23 + $0x78] sm:$0xff]  ;;  %v262_v25 = vld [vmem:[%s1761_s23 + $0x80] sm:$0xff]  ;;  %v263_v26 = vld [vmem:[%s1761_s23 + $0x88] sm:$0xff] }
  0x1c   : > { %1392 = vmatmul.mubr.msk.f32.gmra.mrb[2].mxu0 %vm289_vm0, %v249_v12  ;;  %v264_v27 = vld [vmem:[%s1761_s23 + $0x90] sm:$0xff]  ;;  %v265_v28 = vld [vmem:[%s1761_s23 + $0x98] sm:$0xff]  ;;  %v266_v29 = vld [vmem:[%s1761_s23 + $0xa0] sm:$0xff] }
  0x1d   : > { %1394 = vmatprep.mubr.msk.f32.mxu0 %vm289_vm0, %v250_v13  ;;  %v267_v30 = vld [vmem:[%s1761_s23 + $0xa8] sm:$0xff]  ;;  %v268_v31 = vld [vmem:[%s1761_s23 + $0xb0] sm:$0xff]  ;;  %v269_v32 = vld [vmem:[%s1761_s23 + $0xb8] sm:$0xff] }
  0x1e   : > { %v270_v33 = vld [vmem:[%s1761_s23 + $0xc0] sm:$0xff]  ;;  %v271_v34 = vld [vmem:[%s1761_s23 + $0xc8] sm:$0xff]  ;;  %v272_v35 = vld [vmem:[%s1761_s23 + $0xd0] sm:$0xff] }
  0x1f   : > { %v273_v36 = vld [vmem:[%s1761_s23 + $0xd8] sm:$0xff]  ;;  %v274_v37 = vld [vmem:[%s1761_s23 + $0xe0] sm:$0xff]  ;;  %v275_v38 = vld [vmem:[%s1761_s23 + $0xe8] sm:$0xff] }
  0x20   : > { %1395 = vmatmul.mubr.msk.f32.gmra.mrb[4].mxu0 %vm289_vm0, %v251_v14  ;;  %v276_v39 = vld [vmem:[%s1761_s23 + $0xf0] sm:$0xff]  ;;  %v277_v40 = vld [vmem:[%s1761_s23 + $0xf8] sm:$0xff] }
  0x21   : > { %1397 = vmatprep.mubr.msk.f32.mxu0 %vm289_vm0, %v252_v15 }
  0x24   : > { %1398 = vmatmul.mubr.msk.f32.gmra.mrb[6].mxu0 %vm289_vm0, %v253_v16 }
  0x25   : > { %1400 = vmatprep.mubr.msk.f32.mxu0 %vm289_vm0, %v254_v17 }
  0x28   : > { %1401 = vmatmul.mubr.msk.f32.gmra.mrb[8].mxu0 %vm289_vm0, %v255_v18 }
  0x29   : > { %1403 = vmatprep.mubr.msk.f32.mxu0 %vm289_vm0, %v256_v19 }
  0x2c   : > { %1404 = vmatmul.mubr.msk.f32.gmra.mrb[10].mxu0 %vm289_vm0, %v257_v20 }
  0x2d   : > { %1406 = vmatprep.mubr.msk.f32.mxu0 %vm289_vm0, %v258_v21 }
  0x30   : > { %1407 = vmatmul.mubr.msk.f32.gmra.mrb[12].mxu0 %vm289_vm0, %v259_v22 }
  0x31   : > { %1409 = vmatprep.mubr.msk.f32.mxu0 %vm289_vm0, %v260_v23 }
  0x34   : > { %1410 = vmatmul.mubr.msk.f32.gmra.mrb[14].mxu0 %vm289_vm0, %v261_v24 }
  0x35   : > { %1412 = vmatprep.mubr.msk.f32.mxu0 %vm289_vm0, %v262_v25 }
  0x38   : > { %1413 = vmatmul.mubr.msk.f32.gmra.mrb[16].mxu0 %vm289_vm0, %v263_v26 }
  0x39   : > { %1415 = vmatprep.mubr.msk.f32.mxu0 %vm289_vm0, %v264_v27 }
  0x3c   : > { %1416 = vmatmul.mubr.msk.f32.gmra.mrb[18].mxu0 %vm289_vm0, %v265_v28 }
  0x3d   : > { %1418 = vmatprep.mubr.msk.f32.mxu0 %vm289_vm0, %v266_v29 }
  0x40   : > { %1419 = vmatmul.mubr.msk.f32.gmra.mrb[20].mxu0 %vm289_vm0, %v267_v30 }
  0x41   : > { %1421 = vmatprep.mubr.msk.f32.mxu0 %vm289_vm0, %v268_v31 }
  0x44   : > { %1422 = vmatmul.mubr.msk.f32.gmra.mrb[22].mxu0 %vm289_vm0, %v269_v32 }
  0x45   : > { %1424 = vmatprep.mubr.msk.f32.mxu0 %vm289_vm0, %v270_v33 }
  0x48   : > { %1425 = vmatmul.mubr.msk.f32.gmra.mrb[24].mxu0 %vm289_vm0, %v271_v34 }
  0x49   : > { %1427 = vmatprep.mubr.msk.f32.mxu0 %vm289_vm0, %v272_v35 }
  0x4c   : > { %1428 = vmatmul.mubr.msk.f32.gmra.mrb[26].mxu0 %vm289_vm0, %v273_v36 }
  0x4d   : > { %1430 = vmatprep.mubr.msk.f32.mxu0 %vm289_vm0, %v274_v37 }
  0x50   : > { %1431 = vmatmul.mubr.msk.f32.gmra.mrb[28].mxu0 %vm289_vm0, %v275_v38 }
  0x51   : > { %1433 = vmatprep.mubr.msk.f32.mxu0 %vm289_vm0, %v276_v39 }
  0x54   : > { %1434 = vmatmul.mubr.msk.f32.gmra.mrb[30].mxu0 %vm289_vm0, %v277_v40 }
  0xeb   : > { %v1390_v42 = vpop.f32.mrb[0].mxu0 }
  0xec   : > { %v458_v43 = vadd.f32 %v1390_v42, %v1830_v41  ;;  %v452_v44 = vpop.f32.mrb[1].mxu0 }
  0xed   : > { %v453_v45 = vadd.f32 %v1830_v41, %v452_v44 }
  0xee   : > { %v612_v48 = vmax.f32 %v458_v43, 0.0 }
  0xef   : > { %v1393_v46 = vpop.f32.mrb[2].mxu0  ;;  %v611_v47 = vmax.f32 %v453_v45, 0.0 }
  0xf0   : > { %v468_v49 = vadd.f32 %v1393_v46, %v1830_v41  ;;  %v462_v50 = vpop.f32.mrb[3].mxu0 }
  0xf1   : > { %v463_v51 = vadd.f32 %v1830_v41, %v462_v50  ;;  %1440 = vmatprep.mubr.f32.mxu1 %v611_v47 }
  0xf2   : > { %1441 = vmatmul.mubr.f32.vlgmr.msra.gmra.mrb[0].mxu1 %v612_v48  ;;  %v614_v54 = vmax.f32 %v468_v49, 0.0 }
  0xf3   : > { %v613_v52 = vmax.f32 %v463_v51, 0.0  ;;  %v1396_v53 = vpop.f32.mrb[4].mxu0 }
  0xf4   : > { %v478_v55 = vadd.f32 %v1396_v53, %v1830_v41  ;;  %v472_v56 = vpop.f32.mrb[5].mxu0 }
  0xf5   : > { %v473_v57 = vadd.f32 %v1830_v41, %v472_v56  ;;  %1443 = vmatprep.mubr.f32.mxu1 %v613_v52 }
  0xf6   : > { %1444 = vmatmul.mubr.f32.gmra.mrb[2].mxu1 %v614_v54  ;;  %v616_v60 = vmax.f32 %v478_v55, 0.0 }
  0xf7   : > { %v615_v58 = vmax.f32 %v473_v57, 0.0  ;;  %v1399_v59 = vpop.f32.mrb[6].mxu0 }
  0xf8   : > { %v488_v61 = vadd.f32 %v1399_v59, %v1830_v41  ;;  %v482_v62 = vpop.f32.mrb[7].mxu0 }
  0xf9   : > { %v483_v63 = vadd.f32 %v1830_v41, %v482_v62  ;;  %1446 = vmatprep.mubr.f32.mxu1 %v615_v58 }
  0xfa   : > { %1447 = vmatmul.mubr.f32.gmra.mrb[4].mxu1 %v616_v60  ;;  %v618_v2 = vmax.f32 %v488_v61, 0.0 }
  0xfb   : > { %v617_v0 = vmax.f32 %v483_v63, 0.0  ;;  %v1402_v1 = vpop.f32.mrb[8].mxu0 }
  0xfc   : > { %v498_v3 = vadd.f32 %v1402_v1, %v1830_v41  ;;  %v492_v4 = vpop.f32.mrb[9].mxu0 }
  0xfd   : > { %v493_v5 = vadd.f32 %v1830_v41, %v492_v4  ;;  %1449 = vmatprep.mubr.f32.mxu1 %v617_v0 }
  0xfe   : > { %1450 = vmatmul.mubr.f32.gmra.mrb[6].mxu1 %v618_v2  ;;  %v620_v8 = vmax.f32 %v498_v3, 0.0 }
  0xff   : > { %v619_v6 = vmax.f32 %v493_v5, 0.0  ;;  %v1405_v7 = vpop.f32.mrb[10].mxu0 }
 0x100   : > { %v508_v9 = vadd.f32 %v1405_v7, %v1830_v41  ;;  %v502_v10 = vpop.f32.mrb[11].mxu0 }
 0x101   : > { %v503_v11 = vadd.f32 %v1830_v41, %v502_v10  ;;  %1452 = vmatprep.mubr.f32.mxu1 %v619_v6 }
 0x102   : > { %1453 = vmatmul.mubr.f32.gmra.mrb[8].mxu1 %v620_v8  ;;  %v622_v14 = vmax.f32 %v508_v9, 0.0 }
 0x103   : > { %v621_v12 = vmax.f32 %v503_v11, 0.0  ;;  %v1408_v13 = vpop.f32.mrb[12].mxu0  ;;  %v1868_v11 = vld [vmem:[%s2111_s4] ss:$0 sm:$0xff] }
 0x104   : > { %v518_v15 = vadd.f32 %v1408_v13, %v1830_v41  ;;  %v512_v16 = vpop.f32.mrb[13].mxu0 }
 0x105   : > { %v513_v17 = vadd.f32 %v1830_v41, %v512_v16  ;;  %1455 = vmatprep.mubr.f32.mxu1 %v621_v12 }
 0x106   : > { %1456 = vmatmul.mubr.f32.gmra.mrb[10].mxu1 %v622_v14  ;;  %v624_v20 = vmax.f32 %v518_v15, 0.0 }
 0x107   : > { %v623_v18 = vmax.f32 %v513_v17, 0.0  ;;  %v1411_v19 = vpop.f32.mrb[14].mxu0 }
 0x108   : > { %v528_v21 = vadd.f32 %v1411_v19, %v1830_v41  ;;  %v522_v22 = vpop.f32.mrb[15].mxu0 }
 0x109   : > { %v523_v23 = vadd.f32 %v1830_v41, %v522_v22  ;;  %1458 = vmatprep.mubr.f32.mxu1 %v623_v18 }
 0x10a   : > { %1459 = vmatmul.mubr.f32.gmra.mrb[12].mxu1 %v624_v20  ;;  %v626_v26 = vmax.f32 %v528_v21, 0.0 }
 0x10b   : > { %v625_v24 = vmax.f32 %v523_v23, 0.0  ;;  %v1414_v25 = vpop.f32.mrb[16].mxu0 }
 0x10c   : > { %v538_v27 = vadd.f32 %v1414_v25, %v1830_v41  ;;  %v532_v28 = vpop.f32.mrb[17].mxu0 }
 0x10d   : > { %v533_v29 = vadd.f32 %v1830_v41, %v532_v28  ;;  %1461 = vmatprep.mubr.f32.mxu1 %v625_v24 }
 0x10e   : > { %1462 = vmatmul.mubr.f32.gmra.mrb[14].mxu1 %v626_v26  ;;  %v628_v32 = vmax.f32 %v538_v27, 0.0 }
 0x10f   : > { %v627_v30 = vmax.f32 %v533_v29, 0.0  ;;  %v1417_v31 = vpop.f32.mrb[18].mxu0 }
 0x110   : > { %v548_v33 = vadd.f32 %v1417_v31, %v1830_v41  ;;  %v542_v34 = vpop.f32.mrb[19].mxu0 }
 0x111   : > { %v543_v35 = vadd.f32 %v1830_v41, %v542_v34  ;;  %1464 = vmatprep.mubr.f32.mxu1 %v627_v30 }
 0x112   : > { %1465 = vmatmul.mubr.f32.gmra.mrb[16].mxu1 %v628_v32  ;;  %v630_v38 = vmax.f32 %v548_v33, 0.0 }
 0x113   : > { %v629_v36 = vmax.f32 %v543_v35, 0.0  ;;  %v1420_v37 = vpop.f32.mrb[20].mxu0 }
 0x114   : > { %v558_v39 = vadd.f32 %v1420_v37, %v1830_v41  ;;  %v552_v40 = vpop.f32.mrb[21].mxu0 }
 0x115   : > { %v553_v42 = vadd.f32 %v1830_v41, %v552_v40  ;;  %1467 = vmatprep.mubr.f32.mxu1 %v629_v36 }
 0x116   : > { %1468 = vmatmul.mubr.f32.gmra.mrb[18].mxu1 %v630_v38  ;;  %v632_v45 = vmax.f32 %v558_v39, 0.0 }
 0x117   : > { %v631_v43 = vmax.f32 %v553_v42, 0.0  ;;  %v1423_v44 = vpop.f32.mrb[22].mxu0 }
 0x118   : > { %v568_v46 = vadd.f32 %v1423_v44, %v1830_v41  ;;  %v562_v47 = vpop.f32.mrb[23].mxu0 }
 0x119   : > { %v563_v48 = vadd.f32 %v1830_v41, %v562_v47  ;;  %1470 = vmatprep.mubr.f32.mxu1 %v631_v43 }
 0x11a   : > { %1471 = vmatmul.mubr.f32.gmra.mrb[20].mxu1 %v632_v45  ;;  %v634_v51 = vmax.f32 %v568_v46, 0.0 }
 0x11b   : > { %v633_v49 = vmax.f32 %v563_v48, 0.0  ;;  %v1426_v50 = vpop.f32.mrb[24].mxu0 }
 0x11c   : > { %v578_v52 = vadd.f32 %v1426_v50, %v1830_v41  ;;  %v572_v53 = vpop.f32.mrb[25].mxu0 }
 0x11d   : > { %v573_v54 = vadd.f32 %v1830_v41, %v572_v53  ;;  %1473 = vmatprep.mubr.f32.mxu1 %v633_v49 }
 0x11e   : > { %1474 = vmatmul.mubr.f32.gmra.mrb[22].mxu1 %v634_v51  ;;  %v636_v57 = vmax.f32 %v578_v52, 0.0 }
 0x11f   : > { %v635_v55 = vmax.f32 %v573_v54, 0.0  ;;  %v1429_v56 = vpop.f32.mrb[26].mxu0 }
 0x120   : > { %v588_v58 = vadd.f32 %v1429_v56, %v1830_v41  ;;  %v582_v59 = vpop.f32.mrb[27].mxu0 }
 0x121   : > { %v583_v60 = vadd.f32 %v1830_v41, %v582_v59  ;;  %1476 = vmatprep.mubr.f32.mxu1 %v635_v55 }
 0x122   : > { %1477 = vmatmul.mubr.f32.gmra.mrb[24].mxu1 %v636_v57  ;;  %v638_v63 = vmax.f32 %v588_v58, 0.0 }
 0x123   : > { %v637_v61 = vmax.f32 %v583_v60, 0.0  ;;  %v1432_v62 = vpop.f32.mrb[28].mxu0 }
 0x124   : > { %v598_v0 = vadd.f32 %v1432_v62, %v1830_v41  ;;  %v592_v1 = vpop.f32.mrb[29].mxu0 }
 0x125   : > { %v593_v2 = vadd.f32 %v1830_v41, %v592_v1  ;;  %1479 = vmatprep.mubr.f32.mxu1 %v637_v61 }
 0x126   : > { %1480 = vmatmul.mubr.f32.gmra.mrb[26].mxu1 %v638_v63  ;;  %v640_v5 = vmax.f32 %v598_v0, 0.0 }
 0x127   : > { %v639_v3 = vmax.f32 %v593_v2, 0.0  ;;  %v1435_v4 = vpop.f32.mrb[30].mxu0 }
 0x128   : > { %v608_v6 = vadd.f32 %v1435_v4, %v1830_v41  ;;  %v602_v7 = vpop.f32.mrb[31].mxu0 }
 0x129   : > { %v603_v8 = vadd.f32 %v1830_v41, %v602_v7  ;;  %1482 = vmatprep.mubr.f32.mxu1 %v639_v3 }
 0x12a   : > { %1483 = vmatmul.mubr.f32.gmra.mrb[28].mxu1 %v640_v5  ;;  %v642_v10 = vmax.f32 %v608_v6, 0.0 }
 0x12b   : > { %v641_v9 = vmax.f32 %v603_v8, 0.0 }
 0x12d   : > { %1485 = vmatprep.mubr.f32.mxu1 %v641_v9 }
 0x12e   : > { %1486 = vmatmul.mubr.f32.gmra.mrb[30].mxu1 %v642_v10 }
 0x1c5   : > { %v1442_v12 = vpop.f32.mrb[0].mxu1 }
 0x1c6   : > { %v724_v13 = vadd.f32 %v1442_v12, %v1868_v11  ;;  %v718_v14 = vpop.f32.mrb[1].mxu1 }
 0x1c7   : > { %v719_v41 = vadd.f32 %v1868_v11, %v718_v14 }
 0x1c8   : > { %879 = vst.msk [vmem:[%s1872_s7 + $0x8] sm:$0xff] %vm877_vm1, %v724_v13 }
 0x1c9   : > { %878 = vst.msk [vmem:[%s1872_s7] sm:$0xff] %vm877_vm1, %v719_v41  ;;  %v1445_v15 = vpop.f32.mrb[2].mxu1 }
 0x1ca   : > { %v734_v16 = vadd.f32 %v1445_v15, %v1868_v11  ;;  %v728_v17 = vpop.f32.mrb[3].mxu1 }
 0x1cb   : > { %v729_v18 = vadd.f32 %v1868_v11, %v728_v17 }
 0x1cc   : > { %881 = vst.msk [vmem:[%s1872_s7 + $0x18] sm:$0xff] %vm877_vm1, %v734_v16 }
 0x1cd   : > { %880 = vst.msk [vmem:[%s1872_s7 + $0x10] sm:$0xff] %vm877_vm1, %v729_v18  ;;  %v1448_v19 = vpop.f32.mrb[4].mxu1 }
 0x1ce   : > { %v744_v20 = vadd.f32 %v1448_v19, %v1868_v11  ;;  %v738_v21 = vpop.f32.mrb[5].mxu1 }
 0x1cf   : > { %v739_v22 = vadd.f32 %v1868_v11, %v738_v21 }
 0x1d0   : > { %883 = vst.msk [vmem:[%s1872_s7 + $0x28] sm:$0xff] %vm877_vm1, %v744_v20 }
 0x1d1   : > { %882 = vst.msk [vmem:[%s1872_s7 + $0x20] sm:$0xff] %vm877_vm1, %v739_v22  ;;  %v1451_v23 = vpop.f32.mrb[6].mxu1 }
 0x1d2   : > { %v754_v24 = vadd.f32 %v1451_v23, %v1868_v11  ;;  %v748_v25 = vpop.f32.mrb[7].mxu1 }
 0x1d3   : > { %v749_v26 = vadd.f32 %v1868_v11, %v748_v25 }
 0x1d4   : > { %885 = vst.msk [vmem:[%s1872_s7 + $0x38] sm:$0xff] %vm877_vm1, %v754_v24 }
 0x1d5   : > { %884 = vst.msk [vmem:[%s1872_s7 + $0x30] sm:$0xff] %vm877_vm1, %v749_v26  ;;  %v1454_v27 = vpop.f32.mrb[8].mxu1 }
 0x1d6   : > { %v764_v28 = vadd.f32 %v1454_v27, %v1868_v11  ;;  %v758_v29 = vpop.f32.mrb[9].mxu1 }
 0x1d7   : > { %v759_v30 = vadd.f32 %v1868_v11, %v758_v29 }
 0x1d8   : > { %887 = vst.msk [vmem:[%s1872_s7 + $0x48] sm:$0xff] %vm877_vm1, %v764_v28 }
 0x1d9   : > { %886 = vst.msk [vmem:[%s1872_s7 + $0x40] sm:$0xff] %vm877_vm1, %v759_v30  ;;  %v1457_v31 = vpop.f32.mrb[10].mxu1 }
 0x1da   : > { %v774_v32 = vadd.f32 %v1457_v31, %v1868_v11  ;;  %v768_v33 = vpop.f32.mrb[11].mxu1 }
 0x1db   : > { %v769_v34 = vadd.f32 %v1868_v11, %v768_v33 }
 0x1dc   : > { %889 = vst.msk [vmem:[%s1872_s7 + $0x58] sm:$0xff] %vm877_vm1, %v774_v32 }
 0x1dd   : > { %888 = vst.msk [vmem:[%s1872_s7 + $0x50] sm:$0xff] %vm877_vm1, %v769_v34  ;;  %v1460_v35 = vpop.f32.mrb[12].mxu1 }
 0x1de   : > { %v784_v36 = vadd.f32 %v1460_v35, %v1868_v11  ;;  %v778_v37 = vpop.f32.mrb[13].mxu1 }
 0x1df   : > { %v779_v38 = vadd.f32 %v1868_v11, %v778_v37 }
 0x1e0   : > { %891 = vst.msk [vmem:[%s1872_s7 + $0x68] sm:$0xff] %vm877_vm1, %v784_v36 }
 0x1e1   : > { %890 = vst.msk [vmem:[%s1872_s7 + $0x60] sm:$0xff] %vm877_vm1, %v779_v38  ;;  %v1463_v39 = vpop.f32.mrb[14].mxu1 }
 0x1e2   : > { %v794_v40 = vadd.f32 %v1463_v39, %v1868_v11  ;;  %v788_v42 = vpop.f32.mrb[15].mxu1 }
 0x1e3   : > { %v789_v43 = vadd.f32 %v1868_v11, %v788_v42 }
 0x1e4   : > { %893 = vst.msk [vmem:[%s1872_s7 + $0x78] sm:$0xff] %vm877_vm1, %v794_v40 }
 0x1e5   : > { %892 = vst.msk [vmem:[%s1872_s7 + $0x70] sm:$0xff] %vm877_vm1, %v789_v43  ;;  %v1466_v44 = vpop.f32.mrb[16].mxu1 }
 0x1e6   : > { %v804_v45 = vadd.f32 %v1466_v44, %v1868_v11  ;;  %v798_v46 = vpop.f32.mrb[17].mxu1 }
 0x1e7   : > { %v799_v47 = vadd.f32 %v1868_v11, %v798_v46 }
 0x1e8   : > { %895 = vst.msk [vmem:[%s1872_s7 + $0x88] sm:$0xff] %vm877_vm1, %v804_v45 }
 0x1e9   : > { %894 = vst.msk [vmem:[%s1872_s7 + $0x80] sm:$0xff] %vm877_vm1, %v799_v47  ;;  %v1469_v48 = vpop.f32.mrb[18].mxu1 }
 0x1ea   : > { %v814_v49 = vadd.f32 %v1469_v48, %v1868_v11  ;;  %v808_v50 = vpop.f32.mrb[19].mxu1 }
 0x1eb   : > { %v809_v51 = vadd.f32 %v1868_v11, %v808_v50 }
 0x1ec   : > { %897 = vst.msk [vmem:[%s1872_s7 + $0x98] sm:$0xff] %vm877_vm1, %v814_v49 }
 0x1ed   : > { %896 = vst.msk [vmem:[%s1872_s7 + $0x90] sm:$0xff] %vm877_vm1, %v809_v51  ;;  %v1472_v52 = vpop.f32.mrb[20].mxu1 }
 0x1ee   : > { %v824_v53 = vadd.f32 %v1472_v52, %v1868_v11  ;;  %v818_v54 = vpop.f32.mrb[21].mxu1 }
 0x1ef   : > { %v819_v55 = vadd.f32 %v1868_v11, %v818_v54 }
 0x1f0   : > { %899 = vst.msk [vmem:[%s1872_s7 + $0xa8] sm:$0xff] %vm877_vm1, %v824_v53 }
 0x1f1   : > { %898 = vst.msk [vmem:[%s1872_s7 + $0xa0] sm:$0xff] %vm877_vm1, %v819_v55  ;;  %v1475_v56 = vpop.f32.mrb[22].mxu1 }
 0x1f2   : > { %v834_v57 = vadd.f32 %v1475_v56, %v1868_v11  ;;  %v828_v58 = vpop.f32.mrb[23].mxu1 }
 0x1f3   : > { %v829_v59 = vadd.f32 %v1868_v11, %v828_v58 }
 0x1f4   : > { %901 = vst.msk [vmem:[%s1872_s7 + $0xb8] sm:$0xff] %vm877_vm1, %v834_v57 }
 0x1f5   : > { %900 = vst.msk [vmem:[%s1872_s7 + $0xb0] sm:$0xff] %vm877_vm1, %v829_v59  ;;  %v1478_v60 = vpop.f32.mrb[24].mxu1 }
 0x1f6   : > { %v844_v61 = vadd.f32 %v1478_v60, %v1868_v11  ;;  %v838_v62 = vpop.f32.mrb[25].mxu1 }
 0x1f7   : > { %v839_v63 = vadd.f32 %v1868_v11, %v838_v62 }
 0x1f8   : > { %903 = vst.msk [vmem:[%s1872_s7 + $0xc8] sm:$0xff] %vm877_vm1, %v844_v61 }
 0x1f9   : > { %902 = vst.msk [vmem:[%s1872_s7 + $0xc0] sm:$0xff] %vm877_vm1, %v839_v63  ;;  %v1481_v0 = vpop.f32.mrb[26].mxu1 }
 0x1fa   : > { %v854_v1 = vadd.f32 %v1481_v0, %v1868_v11  ;;  %v848_v2 = vpop.f32.mrb[27].mxu1 }
 0x1fb   : > { %v849_v3 = vadd.f32 %v1868_v11, %v848_v2 }
 0x1fc   : > { %905 = vst.msk [vmem:[%s1872_s7 + $0xd8] sm:$0xff] %vm877_vm1, %v854_v1 }
 0x1fd   : > { %904 = vst.msk [vmem:[%s1872_s7 + $0xd0] sm:$0xff] %vm877_vm1, %v849_v3  ;;  %v1484_v4 = vpop.f32.mrb[28].mxu1 }
 0x1fe   : > { %v864_v5 = vadd.f32 %v1484_v4, %v1868_v11  ;;  %v858_v6 = vpop.f32.mrb[29].mxu1 }
 0x1ff   : > { %v859_v7 = vadd.f32 %v1868_v11, %v858_v6  ;;  %916 = sbr.rel (!%p1731_p4) target bundleno = 574 (0x23e), region = 44 }
 0x200   : > { %907 = vst.msk [vmem:[%s1872_s7 + $0xe8] sm:$0xff] %vm877_vm1, %v864_v5 }
 0x201   : > { %906 = vst.msk [vmem:[%s1872_s7 + $0xe0] sm:$0xff] %vm877_vm1, %v859_v7  ;;  %v1487_v8 = vpop.f32.mrb[30].mxu1 }
 0x202   : > { %v874_v9 = vadd.f32 %v1487_v8, %v1868_v11  ;;  %v868_v10 = vpop.f32.mrb[31].mxu1 }
 0x203   : > { %v869_v12 = vadd.f32 %v1868_v11, %v868_v10 }
 0x204   : > { %909 = vst.msk [vmem:[%s1872_s7 + $0xf8] sm:$0xff] %vm877_vm1, %v874_v9 }
 0x205   : > { %908 = vst.msk [vmem:[%s1872_s7 + $0xf0] sm:$0xff] %vm877_vm1, %v869_v12 }
 0x206   : > { %s2123_s18 = smov (!%p919_p8, %s918_s18), 32 }
 0x207   : > { %s1292_s13 = sshll.u32 %s2123_s18, 7 }
 0x208   : > { %p1295_p9 = scmp.eq.s32.totalorder %s1292_s13, 0 }
 0x209   : > { %s1981_s14 = sshrl.u32 (!%p1295_p9), %s2123_s18, 5 }
 0x20a   : > { %927 = sbr.rel (%p1295_p9) target bundleno = 574 (0x23e), region = 48  ;;  %p1296_p10 = scmp.le.s32.totalorder (!%p1295_p9), %s1981_s14, 0 }
 0x211   : > { %1205 = sbr.rel (%p1296_p10) target bundleno = 553 (0x229), region = 124  ;;  %s2114_s21 = smov (!%p1296_p10), %s1975_s12 }
 0x212   : > { %s2115_s26 = smov (!%p1296_p10), %s1872_s7  ;;  %s1990_s8 = smov (!%p1296_p10), 0  }
 0x213   : > { %s1992_s15 = smov (!%p1296_p10), 0  }
 0x218 LB: >> { %v1051_v11 = vld [vmem:[%s1650_s26] sm:$0xff]  ;;  %v1053_v13 = vld [vmem:[%s1650_s26 + $0x8] sm:$0xff]  ;;  %v1055_v14 = vld [vmem:[%s1650_s26 + $0x10] sm:$0xff]  ;;  %s1115_s16 = sadd.s32 1, %s1654_s8  ;;  %s1045_s15 = sadd.s32 1, %s1658_s15   ;;  %s1658_s15 = sphi %s1992_s15, %s1045_s15   ;;  %s1654_s8 = sphi %s1990_s8, %s2118_s8   ;;  %s1650_s26 = sphi %s2115_s26, %s2117_s26   ;;  %s1646_s21 = sphi %s2114_s21, %s2116_s21  }
 0x219   : >> { %1052 = vst [vmem:[%s1646_s21] sm:$0xff] %v1051_v11  ;;  %1054 = vst [vmem:[%s1646_s21 + $0x8] sm:$0xff] %v1053_v13  ;;  %v1057_v41 = vld [vmem:[%s1650_s26 + $0x18] sm:$0xff]  ;;  %v1059_v15 = vld [vmem:[%s1650_s26 + $0x20] sm:$0xff]  ;;  %p1116_p11 = scmp.ge.s32.totalorder %s1115_s16, %s1981_s14  ;;  %p1044_p12 = scmp.ge.s32.totalorder %s1045_s15, %s1981_s14 }
 0x21a   : >> { %1056 = vst [vmem:[%s1646_s21 + $0x10] sm:$0xff] %v1055_v14  ;;  %v1061_v16 = vld [vmem:[%s1650_s26 + $0x28] sm:$0xff]  ;;  %1058 = vst [vmem:[%s1646_s21 + $0x18] sm:$0xff] %v1057_v41  ;;  %v1063_v17 = vld [vmem:[%s1650_s26 + $0x30] sm:$0xff] }
 0x21b   : >> { %1060 = vst [vmem:[%s1646_s21 + $0x20] sm:$0xff] %v1059_v15  ;;  %1062 = vst [vmem:[%s1646_s21 + $0x28] sm:$0xff] %v1061_v16  ;;  %v1065_v18 = vld [vmem:[%s1650_s26 + $0x38] sm:$0xff]  ;;  %v1067_v19 = vld [vmem:[%s1650_s26 + $0x40] sm:$0xff]  ;;  %s2125_s16 = smov (%p1116_p11, %s1115_s16), 0 }
 0x21c   : >> { %1064 = vst [vmem:[%s1646_s21 + $0x30] sm:$0xff] %v1063_v17  ;;  %1066 = vst [vmem:[%s1646_s21 + $0x38] sm:$0xff] %v1065_v18  ;;  %v1069_v20 = vld [vmem:[%s1650_s26 + $0x48] sm:$0xff]  ;;  %v1071_v21 = vld [vmem:[%s1650_s26 + $0x50] sm:$0xff]  ;;  %s1297_s17 = sshll.u32 %s2125_s16, 8  ;;  %s2118_s8 = smov %s2125_s16 }
 0x21d   : >> { %1068 = vst [vmem:[%s1646_s21 + $0x40] sm:$0xff] %v1067_v19  ;;  %v1073_v22 = vld [vmem:[%s1650_s26 + $0x58] sm:$0xff]  ;;  %1070 = vst [vmem:[%s1646_s21 + $0x48] sm:$0xff] %v1069_v20  ;;  %v1075_v23 = vld [vmem:[%s1650_s26 + $0x60] sm:$0xff]  ;;  %s2048_s20 = scalar_lea.vmem %s1872_s7, %s1297_s17 [#allocation2]   ;;  %s1121_s23 = scalar_lea.vmem %s1975_s12, %s1297_s17  }
 0x21e   : >> { %1072 = vst [vmem:[%s1646_s21 + $0x50] sm:$0xff] %v1071_v21  ;;  %1074 = vst [vmem:[%s1646_s21 + $0x58] sm:$0xff] %v1073_v22  ;;  %v1077_v24 = vld [vmem:[%s1650_s26 + $0x68] sm:$0xff]  ;;  %v1079_v25 = vld [vmem:[%s1650_s26 + $0x70] sm:$0xff] }
 0x21f   : >> { %1076 = vst [vmem:[%s1646_s21 + $0x60] sm:$0xff] %v1075_v23  ;;  %1078 = vst [vmem:[%s1646_s21 + $0x68] sm:$0xff] %v1077_v24  ;;  %v1081_v26 = vld [vmem:[%s1650_s26 + $0x78] sm:$0xff]  ;;  %v1083_v27 = vld [vmem:[%s1650_s26 + $0x80] sm:$0xff] }
 0x220   : >> { %1080 = vst [vmem:[%s1646_s21 + $0x70] sm:$0xff] %v1079_v25  ;;  %v1085_v28 = vld [vmem:[%s1650_s26 + $0x88] sm:$0xff]  ;;  %1082 = vst [vmem:[%s1646_s21 + $0x78] sm:$0xff] %v1081_v26  ;;  %v1087_v29 = vld [vmem:[%s1650_s26 + $0x90] sm:$0xff] }
 0x221   : >> { %1084 = vst [vmem:[%s1646_s21 + $0x80] sm:$0xff] %v1083_v27  ;;  %1086 = vst [vmem:[%s1646_s21 + $0x88] sm:$0xff] %v1085_v28  ;;  %v1089_v30 = vld [vmem:[%s1650_s26 + $0x98] sm:$0xff]  ;;  %v1091_v31 = vld [vmem:[%s1650_s26 + $0xa0] sm:$0xff] }
 0x222   : >> { %1088 = vst [vmem:[%s1646_s21 + $0x90] sm:$0xff] %v1087_v29  ;;  %1090 = vst [vmem:[%s1646_s21 + $0x98] sm:$0xff] %v1089_v30  ;;  %v1093_v32 = vld [vmem:[%s1650_s26 + $0xa8] sm:$0xff]  ;;  %v1095_v33 = vld [vmem:[%s1650_s26 + $0xb0] sm:$0xff]  ;;  %1047 = sbr.rel (!%p1044_p12) target bundleno = 536 (0x218), region = 130 }
 0x223   : >> { %1092 = vst [vmem:[%s1646_s21 + $0xa0] sm:$0xff] %v1091_v31  ;;  %v1097_v34 = vld [vmem:[%s1650_s26 + $0xb8] sm:$0xff]  ;;  %1094 = vst [vmem:[%s1646_s21 + $0xa8] sm:$0xff] %v1093_v32  ;;  %v1099_v35 = vld [vmem:[%s1650_s26 + $0xc0] sm:$0xff] }
 0x224   : >> { %1096 = vst [vmem:[%s1646_s21 + $0xb0] sm:$0xff] %v1095_v33  ;;  %1098 = vst [vmem:[%s1646_s21 + $0xb8] sm:$0xff] %v1097_v34  ;;  %v1101_v36 = vld [vmem:[%s1650_s26 + $0xc8] sm:$0xff]  ;;  %v1103_v37 = vld [vmem:[%s1650_s26 + $0xd0] sm:$0xff] }
 0x225   : >> { %1100 = vst [vmem:[%s1646_s21 + $0xc0] sm:$0xff] %v1099_v35  ;;  %1102 = vst [vmem:[%s1646_s21 + $0xc8] sm:$0xff] %v1101_v36  ;;  %v1105_v38 = vld [vmem:[%s1650_s26 + $0xd8] sm:$0xff]  ;;  %v1107_v39 = vld [vmem:[%s1650_s26 + $0xe0] sm:$0xff] }
 0x226   : >> { %1104 = vst [vmem:[%s1646_s21 + $0xd0] sm:$0xff] %v1103_v37  ;;  %v1109_v40 = vld [vmem:[%s1650_s26 + $0xe8] sm:$0xff]  ;;  %1106 = vst [vmem:[%s1646_s21 + $0xd8] sm:$0xff] %v1105_v38  ;;  %v1111_v42 = vld [vmem:[%s1650_s26 + $0xf0] sm:$0xff] }
 0x227   : >> { %1108 = vst [vmem:[%s1646_s21 + $0xe0] sm:$0xff] %v1107_v39  ;;  %1110 = vst [vmem:[%s1646_s21 + $0xe8] sm:$0xff] %v1109_v40  ;;  %v1113_v43 = vld [vmem:[%s1650_s26 + $0xf8] sm:$0xff]  ;;  %s2117_s26 = smov %s2048_s20 }
 0x228   : >> { %1112 = vst [vmem:[%s1646_s21 + $0xf0] sm:$0xff] %v1111_v42  ;;  %1114 = vst [vmem:[%s1646_s21 + $0xf8] sm:$0xff] %v1113_v43  ;;  %s2116_s21 = smov %s1121_s23 }
 0x229 PF: > { %s2089_s24 = sand.u32 31, %s2123_s18   ;;  %s1308_s27 = sshll.u32 %s1981_s14, 8 }
 0x22a   : > { %s1126_s28 = scalar_lea.vmem %s1872_s7, %s1308_s27 [#allocation2]   ;;  %s1128_s29 = scalar_lea.vmem %s1975_s12, %s1308_s27  }
 0x22b   : > { %p1302_p13 = scmp.le.s32.totalorder %s2089_s24, 0 }
 0x22c   : > { %s1660_s30 = smov (!%p1302_p13), %s1128_s29   ;;  %s1664_s6 = smov (!%p1302_p13), %s1126_s28  }
 0x22d   : > { %1219 = sbr.rel (%p1302_p13) target bundleno = 574 (0x23e), region = 135  ;;  %s1668_s9 = smov (!%p1302_p13), 0  }
 0x22e   : > { %s1672_s10 = smov (!%p1302_p13), 0  }
 0x234 LB: >> { %v1138_v44 = vld [vmem:[%s1666_s6] sm:$0xff]  ;;  %s1140_s18 = sadd.s32 1, %s1670_s9  ;;  %s1132_s10 = sadd.s32 1, %s1674_s10   ;;  %s1674_s10 = sphi %s1672_s10, %s1132_s10   ;;  %s1670_s9 = sphi %s1668_s9, %s1669_s9   ;;  %s1666_s6 = sphi %s1664_s6, %s1145_s6   ;;  %s1662_s30 = sphi %s1660_s30, %s1146_s30  }
 0x235   : >> { %1139 = vst [vmem:[%s1662_s30] sm:$0xff] %v1138_v44  ;;  %p1141_p0 = scmp.ge.s32.totalorder %s1140_s18, %s2089_s24  ;;  %p1131_p1 = scmp.ge.s32.totalorder %s1132_s10, %s2089_s24 }
 0x237   : >> { %s2127_s18 = smov (%p1141_p0, %s1140_s18), 0  ;;  %1134 = sbr.rel (!%p1131_p1) target bundleno = 564 (0x234), region = 141 }
 0x238   : >> { %s1303_s7 = sshll.u32 %s2127_s18, 3  ;;  %s1669_s9 = smov %s2127_s18  }
 0x239   : >> { %s1145_s6 = scalar_lea.vmem %s1126_s28, %s1303_s7 [#allocation2]   ;;  %s1146_s30 = scalar_lea.vmem %s1128_s29, %s1303_s7  }
 0x23e PF: > { %p12_p2 = scmp.ge.s32.totalorder %s1721_s22, 4   ;;  %s2119_s18 = smov %s1638_s19 }
 0x23f   : > { %s2120_s19 = smov %s1729_s25  ;;  %s2121_s20 = smov %s1721_s22 }
 0x240   :  { %14 = sbr.rel (!%p12_p2) target bundleno = 2 (0x2), region = 152 }

</bundles_post_ra>
